<compile_context>
chip_gen: v6e
topology: v6e:2x2x1
jax: 0.10.0
libtpu: 0.0.40
codegen_flags: <defaults>
</compile_context>

<pallas_src>
import jax
import jax.numpy as jnp
from jax.experimental import pallas as pl
from jax.experimental.pallas import tpu as pltpu


# ----------------------------------------------------------------------------
# Pallas kernel
# ----------------------------------------------------------------------------
def _h_swish_kernel(x_ref, o_ref):
    x = x_ref[...].astype(jnp.float32)
    # h_swish(x) = x * relu6(x + 3) / 6
    y = x * jnp.clip(x + 3.0, 0.0, 6.0) * (1.0 / 6.0)
    o_ref[...] = y.astype(o_ref.dtype)


# ----------------------------------------------------------------------------
# Wrapper
# ----------------------------------------------------------------------------
_LANE = 128
_COL_CANDIDATES = (1024, 512, 256, 128)   # widest first -> lane-dense stores


def _ceil_to(x, m):
    return -(-x // m) * m


def _tile_policy():
    """Return (target bytes per tile buffer, scoped-VMEM limit) per generation."""
    try:
        kind = jax.devices()[0].device_kind.lower()
    except Exception:
        kind = ""
    if "v5 lite" in kind or "v5e" in kind or "v5lite" in kind:
        # v5e: 0.82 TB/s HBM, 16 MiB default scoped VMEM -> 2 MiB tiles suffice.
        return 2 << 20, 24 << 20
    if "7" in kind:
        # v7x: 3.2 TB/s HBM, 64 MiB physical VMEM/TC -> bigger tiles pay off.
        return 8 << 20, 48 << 20
    # v6e / other: 1.4 TB/s HBM, plenty of VMEM.
    return 4 << 20, 32 << 20


@jax.jit
def h_swish(x):
    """Elementwise h_swish on an arbitrary-shaped array via one Pallas kernel."""
    shape, dtype = x.shape, x.dtype
    n = x.size
    if n == 0:
        return x

    itemsize = jnp.dtype(dtype).itemsize
    target_tile_bytes, vmem_limit = _tile_policy()

    # Lane-dense 2-D view (rows, cols). Pick the widest multiple-of-128 column
    # count that divides n exactly so no padding (= extra HBM pass) is needed.
    cols = next((c for c in _COL_CANDIDATES if n % c == 0), None)
    flat = x.reshape(-1)
    padded = False
    if cols is None:
        # Rare fallback: n is not a multiple of 128 -> pad the flat tail.
        cols = _LANE
        n_pad = _ceil_to(n, cols)
        flat = jnp.pad(flat, (0, n_pad - n))
        padded = True
    rows = flat.size // cols
    x2 = flat.reshape(rows, cols)

    # Row-tile: byte-sized target, aligned to the dtype's sublane packing.
    packing = max(8, 32 // itemsize)          # f32:8, bf16:16, int8/fp8:32
    if rows <= packing:
        tile_rows = rows                      # full-extent block for tiny inputs
    else:
        max_rows = max(packing,
                       (target_tile_bytes // (cols * itemsize)) // packing * packing)
        tile_rows = min(max_rows, _ceil_to(rows, packing))
    grid = pl.cdiv(rows, tile_rows)           # partial last block is write-masked

    out = pl.pallas_call(
        _h_swish_kernel,
        out_shape=jax.ShapeDtypeStruct((rows, cols), dtype),
        grid_spec=pl.GridSpec(
            grid=(grid,),
            in_specs=[pl.BlockSpec((tile_rows, cols), lambda i: (i, 0))],
            out_specs=pl.BlockSpec((tile_rows, cols), lambda i: (i, 0)),
        ),
        compiler_params=pltpu.CompilerParams(
            dimension_semantics=("parallel",),
            vmem_limit_bytes=vmem_limit,
        ),
        cost_estimate=pl.CostEstimate(
            flops=4 * n,
            transcendentals=0,
            bytes_accessed=2 * n * itemsize,
        ),
    )(x2)

    if padded:
        return out.reshape(-1)[:n].reshape(shape)
    return out.reshape(shape)


# ----------------------------------------------------------------------------
# Reference (pure JAX) for correctness checking
# ----------------------------------------------------------------------------
def h_swish_ref(x):
    xf = x.astype(jnp.float32)
    return (xf * jnp.clip(xf + 3.0, 0.0, 6.0) / 6.0).astype(x.dtype)


# ----------------------------------------------------------------------------
if __name__ == "__main__":
    key = jax.random.PRNGKey(0)
    k1, k2, k3, k4 = jax.random.split(key, 4)

    tests = [
        # Small NCHW input, as used inside the UNet (n multiple of 128 -> no pad).
        jax.random.normal(k1, (2, 4, 16, 16), jnp.float32) * 4.0,
        # Larger input: multiple lane-dense row tiles.
        jax.random.normal(k2, (2, 64, 32, 32), jnp.float32) * 4.0,
        # bf16 input: exercises sublane-packing-aware tile alignment.
        (jax.random.normal(k3, (2, 8, 16, 16), jnp.float32) * 4.0).astype(jnp.bfloat16),
        # Awkward size (n not a multiple of 128): exercises the pad fallback.
        jax.random.normal(k4, (2, 3, 5, 7), jnp.float32) * 4.0,
    ]

    for x in tests:
        y = jax.block_until_ready(h_swish(x))
        y_ref = h_swish_ref(x)
        assert y.shape == x.shape and y.dtype == x.dtype
        yf, rf = y.astype(jnp.float32), y_ref.astype(jnp.float32)
        assert bool(jnp.all(jnp.isfinite(yf)))
        tol = 1e-6 if x.dtype == jnp.float32 else 1e-2
        assert bool(jnp.allclose(yf, rf, atol=tol, rtol=tol)), (
            x.shape, x.dtype, float(jnp.max(jnp.abs(yf - rf))))

    print("KERNEL_OK")
</pallas_src>

<mosaic_0001>
module attributes {stable_mosaic.version = 11 : i64} {
  func.func @_h_swish_kernel(%arg0: i32, %arg1: memref<2x1024xf32, #tpu.memory_space<vmem>>, %arg2: memref<2x1024xf32, #tpu.memory_space<vmem>>) attributes {dimension_semantics = [#tpu.dimension_semantics<parallel>], iteration_bounds = array<i64: 1>, scalar_prefetch = 0 : i64, scratch_operands = 0 : i64, tpu.core_type = #tpu.core_type<tc>, window_params = [{transform_indices = @transform_0, window_bounds = array<i64: 2, 1024>}, {transform_indices = @transform_1, window_bounds = array<i64: 2, 1024>}]} {
    %c0 = arith.constant 0 : index
    %c0_0 = arith.constant 0 : index
    %0 = vector.load %arg1[%c0, %c0_0] : memref<2x1024xf32, #tpu.memory_space<vmem>>, vector<2x1024xf32>
    %cst = arith.constant 3.000000e+00 : f32
    %1 = vector.broadcast %cst : f32 to vector<2x1024xf32>
    %2 = arith.addf %0, %1 : vector<2x1024xf32>
    %cst_1 = arith.constant 0.000000e+00 : f32
    %cst_2 = arith.constant 6.000000e+00 : f32
    %3 = vector.broadcast %cst_1 : f32 to vector<2x1024xf32>
    %4 = arith.maximumf %3, %2 : vector<2x1024xf32>
    %5 = vector.broadcast %cst_2 : f32 to vector<2x1024xf32>
    %6 = arith.minimumf %5, %4 : vector<2x1024xf32>
    %7 = arith.mulf %0, %6 : vector<2x1024xf32>
    %cst_3 = arith.constant 0.166666672 : f32
    %8 = vector.broadcast %cst_3 : f32 to vector<2x1024xf32>
    %9 = arith.mulf %7, %8 : vector<2x1024xf32>
    %c0_4 = arith.constant 0 : index
    %c0_5 = arith.constant 0 : index
    %10 = vector.load %arg2[%c0_4, %c0_5] : memref<2x1024xf32, #tpu.memory_space<vmem>>, vector<2x1024xf32>
    tpu.vector_store %arg2[%c0_4, %c0_5], %9 {strides = array<i32>} : memref<2x1024xf32, #tpu.memory_space<vmem>>, vector<2x1024xf32>,
    return
  }
  func.func @transform_0(%arg0: i32) -> (i32, i32) {
    %c0_i32 = arith.constant 0 : i32
    %c0_i32_0 = arith.constant 0 : i32
    return %arg0, %c0_i32 : i32, i32
  }
  func.func @transform_1(%arg0: i32) -> (i32, i32) {
    %c0_i32 = arith.constant 0 : i32
    %c0_i32_0 = arith.constant 0 : i32
    return %arg0, %c0_i32 : i32, i32
  }
}

</mosaic_0001>

<bundles_post_ra>
// kernel: h_swish.1
= control target key start
LH: loop header
LB: loop body
LE: loop exit
PB: predicated region body
PF: predicated region fallthrough
CT: control target
= control target key end

     0   :  { %s48_s0 = inlined_call_operand.vmem [shape: f32[2,1024], index: 0, kind: input, shape index: {}]   ;;  %s49_s1 = inlined_call_operand.vmem [shape: f32[2,1024], index: 1, kind: output, shape index: {}]  }
   0x1   :  { %v8_v0 = vld [vmem:[%s48_s0] sm:$0xff]  ;;  %v9_v1 = vld [vmem:[%s48_s0 + $0x8] sm:$0xff] }
   0x2   :  { %v10_v2 = vadd.f32 3.0, %v8_v0  ;;  %v11_v3 = vadd.f32 3.0, %v9_v1 }
   0x4   :  { %v12_v4 = vmax.f32 %v10_v2, 0.0  ;;  %v13_v5 = vmax.f32 %v11_v3, 0.0 }
   0x6   :  { %v14_v6 = vmin.f32 %v12_v4, 6.0  ;;  %v15_v7 = vmin.f32 %v13_v5, 6.0 }
   0x8   :  { %v16_v8 = vmul.f32 %v14_v6, %v8_v0  ;;  %v17_v9 = vmul.f32 %v15_v7, %v9_v1 }
   0xa   :  { %v18_v10 = vmul.f32 0.16666667, %v16_v8  ;;  %v19_v11 = vmul.f32 0.16666667, %v17_v9 }
   0xc   :  { %20 = vst [vmem:[%s49_s1] sm:$0xff] %v18_v10  ;;  %21 = vst [vmem:[%s49_s1 + $0x8] sm:$0xff] %v19_v11 }

</bundles_post_ra>
